<compile_context>
chip_gen: v7x
topology: tpu7x:2x2x1
jax: 0.10.0
libtpu: 0.0.40
codegen_flags: <defaults>
</compile_context>

<pallas_src>
import jax
import jax.numpy as jnp
import numpy as np
from jax.experimental import pallas as pl
from jax.experimental.pallas import tpu as pltpu  # noqa: F401  (TPU backend)

C_IN = 1024
C_HID = 128
N_DISC = 10
N_CONT = 2
HEAD_W = N_DISC + 2 * N_CONT   # 14 real head output columns
HEAD_PAD = 128                 # lane-dense padded head/output width
BN_EPS = 1e-5
LEAKY_SLOPE = 0.1


def qhead_kernel(x_ref, w1_ref, p_ref, wh_ref, out_ref):
    # conv1 (1x1, no bias): bf16 x bf16 -> f32 accumulate on the MXU
    h = jnp.dot(x_ref[...].astype(jnp.bfloat16), w1_ref[...],
                preferred_element_type=jnp.float32)              # (N, 128)

    # bn1: BatchNorm2d in training mode (per-channel batch stats, biased var),
    # single reduction pass: mean = E[h], var = E[h^2] - mean^2
    n_rows = h.shape[0]
    inv_n = 1.0 / float(n_rows)
    s = jnp.sum(h, axis=0, keepdims=True)                        # (1, 128)
    ss = jnp.sum(h * h, axis=0, keepdims=True)                   # (1, 128)
    mean = s * inv_n
    var = ss * inv_n - mean * mean

    p = p_ref[...]                                               # (3, 128)
    gamma = p[0:1, :]
    beta = p[1:2, :]
    head_bias = p[2:3, :]

    h = (h - mean) * jax.lax.rsqrt(var + BN_EPS) * gamma + beta
    # LeakyReLU(0.1)
    h = jnp.where(h >= 0, h, LEAKY_SLOPE * h)

    # fused heads: single (N,128) x (128,128) matmul + bias, lane-dense output
    heads = (jnp.dot(h, wh_ref[...], preferred_element_type=jnp.float32)
             + head_bias)                                        # (N, 128)

    # exp() only on the var columns [12, 14); other lanes pass through
    lane = jax.lax.broadcasted_iota(jnp.int32, heads.shape, 1)
    is_var = (lane >= N_DISC + N_CONT) & (lane < HEAD_W)
    out_ref[...] = jnp.where(is_var, jnp.exp(heads), heads)


def pack_params(params):
    """Host-side, one-time packing of module params into 3 kernel arrays."""
    wh = jnp.zeros((C_HID, HEAD_PAD), jnp.float32)
    wh = wh.at[:, :N_DISC].set(params["wd"])
    wh = wh.at[:, N_DISC:N_DISC + N_CONT].set(params["wmu"])
    wh = wh.at[:, N_DISC + N_CONT:HEAD_W].set(params["wv"])

    hb = jnp.zeros((1, HEAD_PAD), jnp.float32)
    hb = hb.at[:, :N_DISC].set(params["bd"])
    hb = hb.at[:, N_DISC:N_DISC + N_CONT].set(params["bmu"])
    hb = hb.at[:, N_DISC + N_CONT:HEAD_W].set(params["bv"])

    small = jnp.concatenate([params["gamma"], params["beta"], hb], axis=0)  # (3,128)

    return {
        "w1_bf16": params["w1"].astype(jnp.bfloat16),   # (1024, 128) bf16 in HBM
        "small": small,                                 # (3, 128) f32
        "w_heads": wh,                                  # (128, 128) f32
    }


def qhead_forward(x_nchw, packed):
    """x_nchw: (N, 1024, 1, 1) float32.  Returns (disc_logits, mu, var)
    with shapes (N, 10), (N, 2), (N, 2) — matching torch .squeeze() for N>1."""
    n = x_nchw.shape[0]
    x2d = x_nchw.reshape(n, C_IN)                       # glue reshape

    def full_spec(shape):
        return pl.BlockSpec(shape, lambda: (0,) * len(shape))

    out = pl.pallas_call(
        qhead_kernel,
        out_shape=jax.ShapeDtypeStruct((n, HEAD_PAD), jnp.float32),
        in_specs=[
            full_spec(x2d.shape),
            full_spec(packed["w1_bf16"].shape),
            full_spec(packed["small"].shape),
            full_spec(packed["w_heads"].shape),
        ],
        out_specs=full_spec((n, HEAD_PAD)),
    )(x2d, packed["w1_bf16"], packed["small"], packed["w_heads"])

    disc = out[:, :N_DISC]
    mu = out[:, N_DISC:N_DISC + N_CONT]
    var = out[:, N_DISC + N_CONT:HEAD_W]
    return disc, mu, var


def qhead_reference(x_nchw, params):
    """Pure-JAX f32 reference of the PyTorch forward (train-mode BN)."""
    n = x_nchw.shape[0]
    x = x_nchw.reshape(n, C_IN)
    h = x @ params["w1"]
    mean = jnp.mean(h, axis=0, keepdims=True)
    var = jnp.mean((h - mean) ** 2, axis=0, keepdims=True)
    h = (h - mean) / jnp.sqrt(var + BN_EPS)
    h = h * params["gamma"] + params["beta"]
    h = jnp.where(h >= 0, h, LEAKY_SLOPE * h)
    disc = h @ params["wd"] + params["bd"]
    mu = h @ params["wmu"] + params["bmu"]
    v = jnp.exp(h @ params["wv"] + params["bv"])
    return disc, mu, v


def init_params(key):
    ks = jax.random.split(key, 8)
    # deterministic synthetic init (roughly PyTorch-scale fan-in scaling)
    w1 = jax.random.normal(ks[0], (C_IN, C_HID), jnp.float32) * (1.0 / np.sqrt(C_IN))
    gamma = jnp.ones((1, C_HID), jnp.float32)
    beta = jnp.zeros((1, C_HID), jnp.float32)
    wd = jax.random.normal(ks[1], (C_HID, N_DISC), jnp.float32) * (1.0 / np.sqrt(C_HID))
    bd = jax.random.normal(ks[2], (1, N_DISC), jnp.float32) * 0.01
    wmu = jax.random.normal(ks[3], (C_HID, N_CONT), jnp.float32) * (1.0 / np.sqrt(C_HID))
    bmu = jax.random.normal(ks[4], (1, N_CONT), jnp.float32) * 0.01
    wv = jax.random.normal(ks[5], (C_HID, N_CONT), jnp.float32) * (1.0 / np.sqrt(C_HID))
    bv = jax.random.normal(ks[6], (1, N_CONT), jnp.float32) * 0.01
    return {"w1": w1, "gamma": gamma, "beta": beta,
            "wd": wd, "bd": bd, "wmu": wmu, "bmu": bmu, "wv": wv, "bv": bv}


if __name__ == "__main__":
    key = jax.random.PRNGKey(0)
    k_x, k_p = jax.random.split(key)

    N = 8  # small batch; channel dims (1024/128/10/2) are fixed by the module
    x = jax.random.normal(k_x, (N, C_IN, 1, 1), jnp.float32)
    params = init_params(k_p)
    packed = pack_params(params)

    disc, mu, var = qhead_forward(x, packed)
    jax.block_until_ready((disc, mu, var))

    disc_r, mu_r, var_r = qhead_reference(x, params)
    # Tolerance relaxed vs the f32 reference because conv1 runs as a
    # bf16 x bf16 -> f32 MXU matmul (per perf review).
    np.testing.assert_allclose(np.asarray(disc), np.asarray(disc_r), rtol=5e-2, atol=5e-2)
    np.testing.assert_allclose(np.asarray(mu), np.asarray(mu_r), rtol=5e-2, atol=5e-2)
    np.testing.assert_allclose(np.asarray(var), np.asarray(var_r), rtol=5e-2, atol=5e-2)

    print("KERNEL_OK")
</pallas_src>

<mosaic_0001>
module attributes {stable_mosaic.version = 11 : i64} {
  func.func @qhead_kernel(%arg0: memref<8x1024xf32, #tpu.memory_space<vmem>>, %arg1: memref<1024x128xbf16, #tpu.memory_space<vmem>>, %arg2: memref<3x128xf32, #tpu.memory_space<vmem>>, %arg3: memref<128x128xf32, #tpu.memory_space<vmem>>, %arg4: memref<8x128xf32, #tpu.memory_space<vmem>>) attributes {dimension_semantics = [], scalar_prefetch = 0 : i64, scratch_operands = 0 : i64, tpu.core_type = #tpu.core_type<tc>} {
    %c0 = arith.constant 0 : index
    %c0_0 = arith.constant 0 : index
    %0 = vector.load %arg0[%c0, %c0_0] : memref<8x1024xf32, #tpu.memory_space<vmem>>, vector<8x1024xf32>
    %1 = arith.truncf %0 : vector<8x1024xf32> to vector<8x1024xbf16>
    %c0_1 = arith.constant 0 : index
    %c0_2 = arith.constant 0 : index
    %2 = vector.load %arg1[%c0_1, %c0_2] : memref<1024x128xbf16, #tpu.memory_space<vmem>>, vector<1024x128xbf16>
    %cst = arith.constant dense<0.000000e+00> : vector<8x128xf32>
    %3 = tpu.matmul %1, %2, %cst {dimension_numbers = #tpu.dot_dimension_numbers<[1], [0], [0], [1], [0, 0, 1, 1], [], []>} : vector<8x1024xbf16>, vector<1024x128xbf16>, vector<8x128xf32> -> vector<8x128xf32>
    %cst_3 = arith.constant dense<0.000000e+00> : vector<128xf32>
    %4 = vector.multi_reduction <add>, %3, %cst_3 [0] : vector<8x128xf32> to vector<128xf32>
    %5 = vector.shape_cast %4 : vector<128xf32> to vector<1x128xf32>
    %6 = arith.mulf %3, %3 : vector<8x128xf32>
    %cst_4 = arith.constant dense<0.000000e+00> : vector<128xf32>
    %7 = vector.multi_reduction <add>, %6, %cst_4 [0] : vector<8x128xf32> to vector<128xf32>
    %8 = vector.shape_cast %7 : vector<128xf32> to vector<1x128xf32>
    %cst_5 = arith.constant 1.250000e-01 : f32
    %9 = vector.broadcast %cst_5 : f32 to vector<1x128xf32>
    %10 = arith.mulf %5, %9 : vector<1x128xf32>
    %cst_6 = arith.constant 1.250000e-01 : f32
    %11 = vector.broadcast %cst_6 : f32 to vector<1x128xf32>
    %12 = arith.mulf %8, %11 : vector<1x128xf32>
    %13 = arith.mulf %10, %10 : vector<1x128xf32>
    %14 = arith.subf %12, %13 : vector<1x128xf32>
    %c0_7 = arith.constant 0 : index
    %c0_8 = arith.constant 0 : index
    %15 = vector.load %arg2[%c0_7, %c0_8] : memref<3x128xf32, #tpu.memory_space<vmem>>, vector<3x128xf32>
    %16 = vector.extract_strided_slice %15 {offsets = [0, 0], sizes = [1, 128], strides = [1, 1]} : vector<3x128xf32> to vector<1x128xf32>
    %17 = vector.extract_strided_slice %15 {offsets = [1, 0], sizes = [1, 128], strides = [1, 1]} : vector<3x128xf32> to vector<1x128xf32>
    %18 = vector.extract_strided_slice %15 {offsets = [2, 0], sizes = [1, 128], strides = [1, 1]} : vector<3x128xf32> to vector<1x128xf32>
    %19 = vector.broadcast %10 : vector<1x128xf32> to vector<8x128xf32>
    %20 = arith.subf %3, %19 : vector<8x128xf32>
    %cst_9 = arith.constant 9.99999974E-6 : f32
    %21 = vector.broadcast %cst_9 : f32 to vector<1x128xf32>
    %22 = arith.addf %14, %21 : vector<1x128xf32>
    %23 = math.rsqrt %22 : vector<1x128xf32>
    %24 = vector.broadcast %23 : vector<1x128xf32> to vector<8x128xf32>
    %25 = arith.mulf %20, %24 : vector<8x128xf32>
    %26 = vector.broadcast %16 : vector<1x128xf32> to vector<8x128xf32>
    %27 = arith.mulf %25, %26 : vector<8x128xf32>
    %28 = vector.broadcast %17 : vector<1x128xf32> to vector<8x128xf32>
    %29 = arith.addf %27, %28 : vector<8x128xf32>
    %cst_10 = arith.constant 0.000000e+00 : f32
    %30 = vector.broadcast %cst_10 : f32 to vector<8x128xf32>
    %31 = arith.cmpf oge, %29, %30 : vector<8x128xf32>
    %cst_11 = arith.constant 1.000000e-01 : f32
    %32 = vector.broadcast %cst_11 : f32 to vector<8x128xf32>
    %33 = arith.mulf %32, %29 : vector<8x128xf32>
    %34 = arith.select %31, %29, %33 : vector<8x128xi1>, vector<8x128xf32>
    %c0_12 = arith.constant 0 : index
    %c0_13 = arith.constant 0 : index
    %35 = vector.load %arg3[%c0_12, %c0_13] : memref<128x128xf32, #tpu.memory_space<vmem>>, vector<128x128xf32>
    %cst_14 = arith.constant dense<0.000000e+00> : vector<8x128xf32>
    %36 = tpu.matmul %34, %35, %cst_14 {dimension_numbers = #tpu.dot_dimension_numbers<[1], [0], [0], [1], [0, 0, 1, 1], [], []>} : vector<8x128xf32>, vector<128x128xf32>, vector<8x128xf32> -> vector<8x128xf32>
    %37 = vector.broadcast %18 : vector<1x128xf32> to vector<8x128xf32>
    %38 = arith.addf %36, %37 : vector<8x128xf32>
    %39 = tpu.iota {dimensions = array<i32: 1>} : vector<8x128xi32>
    %c12_i32 = arith.constant 12 : i32
    %40 = vector.broadcast %c12_i32 : i32 to vector<8x128xi32>
    %41 = arith.cmpi sge, %39, %40 : vector<8x128xi32>
    %c14_i32 = arith.constant 14 : i32
    %42 = vector.broadcast %c14_i32 : i32 to vector<8x128xi32>
    %43 = arith.cmpi slt, %39, %42 : vector<8x128xi32>
    %44 = arith.andi %41, %43 : vector<8x128xi1>
    %45 = math.exp %38 : vector<8x128xf32>
    %46 = arith.select %44, %45, %38 : vector<8x128xi1>, vector<8x128xf32>
    %c0_15 = arith.constant 0 : index
    %c0_16 = arith.constant 0 : index
    %47 = vector.load %arg4[%c0_15, %c0_16] : memref<8x128xf32, #tpu.memory_space<vmem>>, vector<8x128xf32>
    tpu.vector_store %arg4[%c0_15, %c0_16], %46 {strides = array<i32>} : memref<8x128xf32, #tpu.memory_space<vmem>>, vector<8x128xf32>,
    return
  }
}

</mosaic_0001>

<bundles_post_ra>
// kernel: tpu_custom_call.1
= control target key start
LH: loop header
LB: loop body
LE: loop exit
PB: predicated region body
PF: predicated region fallthrough
CT: control target
= control target key end

     0   :  { %9 = vsyncpa [#allocation3], 0  ;;  %s1386_s0 = inlined_call_operand.hbm [shape: f32[8,1024], index: 0, kind: input, shape index: {}]   ;;  %s1387_s1 = inlined_call_operand.hbm [shape: bf16[1024,128], index: 1, kind: input, shape index: {}]   ;;  %s1388_s2 = inlined_call_operand.vmem [shape: f32[3,128], index: 2, kind: input, shape index: {}]   ;;  %s1389_s3 = inlined_call_operand.hbm [shape: f32[128,128], index: 3, kind: input, shape index: {}]   ;;  %s1390_s4 = inlined_call_operand.hbm [shape: f32[8,128], index: 4, kind: output, shape index: {}]  }
   0x1   :  { %10 = vsyncpa [#allocation6], 0 }
   0x2   :  { %11 = vsyncpa [#allocation4], 0  ;;  %s1297_s15 = smov [#allocation5]   ;;  %s1203_s19 = scalar_lea.hbm %s1387_s1, 8192 }
   0x3   :  { %s27_s16 = sshll.u32 %s1297_s15, 4  ;;  %p1204_p0 = scmp.ne.s32.totalorder %s1387_s1, %s1203_s19  ;;  %s28_s16 = int_to_ptr.vmem [resolvable:$true] %s27_s16 }
   0x4   :  { %p1207_p1 = scmp.lt.u32.totalorder %s1203_s19, %s1387_s1 }
   0x6   :  { %p1209_p2 = pnand %p1207_p1, %p1204_p0 }
   0x8   :  { %1212 = shalt.err (!%p1209_p2)
}
   0x9   :  { %s1213_s24 = scalar_lea.vmem %s28_s16, 8192  ;;  %p1218_p4 = scmp.lt.s32.totalorder %s28_s16, %s28_s16 }
   0xa   :  { %p1214_p3 = scmp.ne.s32.totalorder %s28_s16, %s1213_s24  ;;  %p1219_p5 = scmp.lt.s32.totalorder %s1213_s24, %s1213_s24 }
   0xc   :  { %p1220_p6 = por %p1219_p5, %p1218_p4 }
   0xe   :  { %p1221_p7 = pnand %p1220_p6, %p1214_p3 }
  0x10   :  { %1224 = shalt.err (!%p1221_p7)
}
  0x11   :  { %s1298_s25 = smov 64   ;;  %s1299_s26 = smov 4  }
  0x12   :  { %33 = dma.hbm_to_vmem [thread:$0]  %s1387_s1, 8192, %s28_s16, [#allocation6], %s1298_s25, %s1298_s25, %s1299_s26  }
  0x13   :  { %s1300_s29 = smov [#allocation2]   ;;  %s1301_s5 = smov [#allocation7]  }
  0x14   :  { %s18_s30 = sshll.u32 %s1300_s29, 4  ;;  %s41_s6 = sshll.u32 %s1301_s5, 4  ;;  %s19_s30 = int_to_ptr.vmem [resolvable:$true] %s18_s30  ;;  %s42_s6 = int_to_ptr.vmem [resolvable:$true] %s41_s6 }
  0x15   :  { %s1225_s9 = scalar_lea.hbm %s1386_s0, 1024 }
  0x16   :  { %p1226_p8 = scmp.ne.s32.totalorder %s1386_s0, %s1225_s9  ;;  %p1229_p9 = scmp.lt.u32.totalorder %s1225_s9, %s1386_s0 }
  0x18   :  { %p1231_p10 = pnand %p1229_p9, %p1226_p8 }
  0x1a   :  { %1234 = shalt.err (!%p1231_p10)
}
  0x1b   :  { %s1235_s1 = scalar_lea.vmem %s19_s30, 1024  ;;  %p1240_p12 = scmp.lt.s32.totalorder %s19_s30, %s19_s30 }
  0x1c   :  { %p1236_p11 = scmp.ne.s32.totalorder %s19_s30, %s1235_s1  ;;  %p1241_p13 = scmp.lt.s32.totalorder %s1235_s1, %s1235_s1 }
  0x1e   :  { %p1242_p0 = por %p1241_p13, %p1240_p12 }
  0x20   :  { %p1243_p1 = pnand %p1242_p0, %p1236_p11 }
  0x22   :  { %1246 = shalt.err (!%p1243_p1)
}
  0x23   :  { %21 = dma.hbm_to_vmem [thread:$0]  %s1386_s0, 1024, %s19_s30, [#allocation3]  }
  0x24   :  { %s1247_s18 = scalar_lea.hbm %s1389_s3, 2048 }
  0x25   :  { %p1248_p2 = scmp.ne.s32.totalorder %s1389_s3, %s1247_s18  ;;  %p1251_p3 = scmp.lt.u32.totalorder %s1247_s18, %s1389_s3 }
  0x27   :  { %p1253_p4 = pnand %p1251_p3, %p1248_p2 }
  0x29   :  { %1256 = shalt.err (!%p1253_p4)
}
  0x2a   :  { %s1257_s23 = scalar_lea.vmem %s42_s6, 2048  ;;  %p1262_p6 = scmp.lt.s32.totalorder %s42_s6, %s42_s6 }
  0x2b   :  { %p1258_p5 = scmp.ne.s32.totalorder %s42_s6, %s1257_s23  ;;  %p1263_p7 = scmp.lt.s32.totalorder %s1257_s23, %s1257_s23 }
  0x2d   :  { %p1264_p8 = por %p1263_p7, %p1262_p6 }
  0x2f   :  { %p1265_p9 = pnand %p1264_p8, %p1258_p5 }
  0x31   :  { %1268 = shalt.err (!%p1265_p9)
}
  0x32   :  { %s1302_s0 = smov 128   ;;  %s1303_s24 = smov 8  }
  0x33   :  { %47 = dma.hbm_to_vmem [thread:$0]  %s1389_s3, 2048, %s42_s6, [#allocation6], %s1302_s0, %s1302_s0, %s1303_s24  }
  0x34   :  { %1291 = dma.done.wait [#allocation3], 1024  }
  0x35   :  { %1292 = vsyncadd [#allocation3], 4294966272 }
  0x36   :  { %1293 = dma.done.wait [#allocation6], 10240  }
  0x37   :  { %1294 = vsyncadd [#allocation6], 4294957056  ;;  %v1135_v0 = vld [vmem:[#allocation5 + $0x40] sm:$0xff]   ;;  %v1139_v4 = vld [vmem:[#allocation5 + $0x48] sm:$0xff]   ;;  %vm1305_vm0 = vmmov 0  }
  0x38   :  { %v1136_v1 = vld [vmem:[#allocation5 + $0xc0] sm:$0xff]   ;;  %960 = vmatprep.subr.bf16.mxu0 %v1135_v0  ;;  %v1140_v5 = vld [vmem:[#allocation5 + $0xc8] sm:$0xff]   ;;  %v1143_v8 = vld [vmem:[#allocation5 + $0x50] sm:$0xff]  }
  0x39   :  { %v1137_v2 = vld [vmem:[#allocation5] sm:$0xff]   ;;  %982 = vmatprep.subr.bf16.mxu1 %v1136_v1  ;;  %v1141_v6 = vld [vmem:[#allocation5 + $0x8] sm:$0xff]   ;;  %v1144_v9 = vld [vmem:[#allocation5 + $0xd0] sm:$0xff]  }
  0x3a   :  { %v1138_v3 = vld [vmem:[#allocation5 + $0x80] sm:$0xff]   ;;  %961 = vmatpush3.bf16.msra.mxu0 %v1137_v2  ;;  %v1142_v7 = vld [vmem:[#allocation5 + $0x88] sm:$0xff]   ;;  %v1145_v10 = vld [vmem:[#allocation5 + $0x10] sm:$0xff]  }
  0x3b   :  { %983 = vmatpush3.bf16.msra.mxu1 %v1138_v3  ;;  %962 = vmatprep.subr.bf16.mxu0 %v1139_v4  ;;  %v1146_v11 = vld [vmem:[#allocation5 + $0x90] sm:$0xff]   ;;  %v1147_v12 = vld [vmem:[#allocation5 + $0x58] sm:$0xff]   ;;  %v1151_v16 = vld [vmem:[#allocation5 + $0x60] sm:$0xff]  }
  0x3c   :  { %984 = vmatprep.subr.bf16.mxu1 %v1140_v5  ;;  %v1148_v13 = vld [vmem:[#allocation5 + $0xd8] sm:$0xff]   ;;  %v1152_v17 = vld [vmem:[#allocation5 + $0xe0] sm:$0xff]   ;;  %v1155_v20 = vld [vmem:[#allocation5 + $0x68] sm:$0xff]  }
  0x3d   :  { %v1149_v14 = vld [vmem:[#allocation5 + $0x18] sm:$0xff]   ;;  %v1153_v18 = vld [vmem:[#allocation5 + $0x20] sm:$0xff]   ;;  %v1156_v21 = vld [vmem:[#allocation5 + $0xe8] sm:$0xff]  }
  0x3e   :  { %963 = vmatpush3.bf16.msra.mxu0 %v1141_v6  ;;  %v1150_v15 = vld [vmem:[#allocation5 + $0x98] sm:$0xff]   ;;  %v1154_v19 = vld [vmem:[#allocation5 + $0xa0] sm:$0xff]   ;;  %v1157_v22 = vld [vmem:[#allocation5 + $0x28] sm:$0xff]  }
  0x3f   :  { %985 = vmatpush3.bf16.msra.mxu1 %v1142_v7  ;;  %964 = vmatprep.subr.bf16.mxu0 %v1143_v8  ;;  %v1158_v23 = vld [vmem:[#allocation5 + $0xa8] sm:$0xff]   ;;  %v1159_v24 = vld [vmem:[#allocation5 + $0x70] sm:$0xff]   ;;  %v1163_v28 = vld [vmem:[#allocation5 + $0x78] sm:$0xff]  }
  0x40   :  { %986 = vmatprep.subr.bf16.mxu1 %v1144_v9  ;;  %v1160_v25 = vld [vmem:[#allocation5 + $0xf0] sm:$0xff]   ;;  %v1164_v29 = vld [vmem:[#allocation5 + $0xf8] sm:$0xff]   ;;  %v59_v32 = vld [vmem:[#allocation2 + $0x8] sm:$0xff] }
  0x41   :  { %v1161_v26 = vld [vmem:[#allocation5 + $0x30] sm:$0xff]   ;;  %v1165_v30 = vld [vmem:[#allocation5 + $0x38] sm:$0xff]   ;;  %v58_v34 = vld [vmem:[#allocation2] sm:$0xff]  ;;  %v67_v35 = vpack.c.bf16 %v59_v32, %v59_v32 }
  0x42   :  { %965 = vmatpush3.bf16.msra.mxu0 %v1145_v10  ;;  %v1162_v27 = vld [vmem:[#allocation5 + $0xb0] sm:$0xff]   ;;  %v1166_v31 = vld [vmem:[#allocation5 + $0xb8] sm:$0xff]   ;;  %v66_v37 = vpack.c.bf16 %v58_v34, %v58_v34  ;;  %v1167_v40 = vld [vmem:[#allocation5 + $0x140] sm:$0xff]  }
  0x43   :  { %987 = vmatpush3.bf16.msra.mxu1 %v1146_v11  ;;  %966 = vmatprep.subr.bf16.mxu0 %v1147_v12  ;;  %v61_v33 = vld [vmem:[#allocation2 + $0x18] sm:$0xff]  ;;  %v60_v38 = vld [vmem:[#allocation2 + $0x10] sm:$0xff]  ;;  %v1168_v41 = vld [vmem:[#allocation5 + $0x1c0] sm:$0xff]  }
  0x44   :  { %988 = vmatprep.subr.bf16.mxu1 %v1148_v13  ;;  %v69_v36 = vpack.c.bf16 %v61_v33, %v61_v33  ;;  %v68_v39 = vpack.c.bf16 %v60_v38, %v60_v38  ;;  %618 = vmatprep.mubr.bf16.mxu0 %v67_v35  ;;  %v1169_v42 = vld [vmem:[#allocation5 + $0x100] sm:$0xff]   ;;  %v1171_v44 = vld [vmem:[#allocation5 + $0x148] sm:$0xff]   ;;  %v1175_v48 = vld [vmem:[#allocation5 + $0x150] sm:$0xff]  }
  0x45   :  { %v1170_v43 = vld [vmem:[#allocation5 + $0x180] sm:$0xff]   ;;  %v1172_v45 = vld [vmem:[#allocation5 + $0x1c8] sm:$0xff]   ;;  %v1176_v49 = vld [vmem:[#allocation5 + $0x1d0] sm:$0xff]  }
  0x46   :  { %967 = vmatpush3.bf16.msra.mxu0 %v1149_v14  ;;  %658 = vmatprep.mubr.bf16.mxu1 %v69_v36  ;;  %v1173_v46 = vld [vmem:[#allocation5 + $0x108] sm:$0xff]   ;;  %v1177_v50 = vld [vmem:[#allocation5 + $0x110] sm:$0xff]   ;;  %v1179_v52 = vld [vmem:[#allocation5 + $0x158] sm:$0xff]  }
  0x47   :  { %989 = vmatpush3.bf16.msra.mxu1 %v1150_v15  ;;  %968 = vmatprep.subr.bf16.mxu0 %v1151_v16  ;;  %v1174_v47 = vld [vmem:[#allocation5 + $0x188] sm:$0xff]   ;;  %v1178_v51 = vld [vmem:[#allocation5 + $0x190] sm:$0xff]   ;;  %v1180_v53 = vld [vmem:[#allocation5 + $0x1d8] sm:$0xff]  }
  0x48   :  { %990 = vmatprep.subr.bf16.mxu1 %v1152_v17  ;;  %v1181_v54 = vld [vmem:[#allocation5 + $0x118] sm:$0xff]   ;;  %v1183_v56 = vld [vmem:[#allocation5 + $0x160] sm:$0xff]   ;;  %v1187_v60 = vld [vmem:[#allocation5 + $0x168] sm:$0xff]  }
  0x49   :  { %v1182_v55 = vld [vmem:[#allocation5 + $0x198] sm:$0xff]   ;;  %v1184_v57 = vld [vmem:[#allocation5 + $0x1e0] sm:$0xff]   ;;  %v1188_v61 = vld [vmem:[#allocation5 + $0x1e8] sm:$0xff]  }
  0x4a   :  { %969 = vmatpush3.bf16.msra.mxu0 %v1153_v18  ;;  %v1185_v58 = vld [vmem:[#allocation5 + $0x120] sm:$0xff]   ;;  %v1189_v62 = vld [vmem:[#allocation5 + $0x128] sm:$0xff]   ;;  %v1191_v0 = vld [vmem:[#allocation5 + $0x170] sm:$0xff]  }
  0x4b   :  { %991 = vmatpush3.bf16.msra.mxu1 %v1154_v19  ;;  %970 = vmatprep.subr.bf16.mxu0 %v1155_v20  ;;  %v1186_v59 = vld [vmem:[#allocation5 + $0x1a0] sm:$0xff]   ;;  %v1190_v63 = vld [vmem:[#allocation5 + $0x1a8] sm:$0xff]   ;;  %v1192_v1 = vld [vmem:[#allocation5 + $0x1f0] sm:$0xff]   ;;  %v1304_v19 = vmov 0.0|0.0  }
  0x4c   :  { %992 = vmatprep.subr.bf16.mxu1 %v1156_v21  ;;  %v1193_v2 = vld [vmem:[#allocation5 + $0x130] sm:$0xff]   ;;  %v1195_v4 = vld [vmem:[#allocation5 + $0x178] sm:$0xff]   ;;  %v63_v8 = vld [vmem:[#allocation2 + $0x28] sm:$0xff] }
  0x4d   :  { %v1194_v3 = vld [vmem:[#allocation5 + $0x1b0] sm:$0xff]   ;;  %v1196_v5 = vld [vmem:[#allocation5 + $0x1f8] sm:$0xff]   ;;  %v71_v10 = vpack.c.bf16 %v63_v8, %v63_v8  ;;  %v62_v12 = vld [vmem:[#allocation2 + $0x20] sm:$0xff] }
  0x4e   :  { %971 = vmatpush3.bf16.msra.mxu0 %v1157_v22  ;;  %v1197_v6 = vld [vmem:[#allocation5 + $0x138] sm:$0xff]   ;;  %v64_v13 = vld [vmem:[#allocation2 + $0x30] sm:$0xff]  ;;  %v70_v14 = vpack.c.bf16 %v62_v12, %v62_v12  ;;  %v781_v16 = vld [vmem:[#allocation7] sm:$0xff] }
  0x4f   :  { %993 = vmatpush3.bf16.msra.mxu1 %v1158_v23  ;;  %972 = vmatprep.subr.bf16.mxu0 %v1159_v24  ;;  %v1198_v7 = vld [vmem:[#allocation5 + $0x1b8] sm:$0xff]   ;;  %v72_v15 = vpack.c.bf16 %v64_v13, %v64_v13  ;;  %v782_v17 = vld [vmem:[#allocation7 + $0x8] sm:$0xff]  ;;  %v783_v20 = vld [vmem:[#allocation7 + $0x10] sm:$0xff] }
  0x50   :  { %994 = vmatprep.subr.bf16.mxu1 %v1160_v25  ;;  %v65_v9 = vld [vmem:[#allocation2 + $0x38] sm:$0xff]  ;;  %v1101_v18 = vpack.c.bf16 %v782_v17, %v781_v16  ;;  %v785_v23 = vld [vmem:[#allocation7 + $0x20] sm:$0xff]  ;;  %v786_v24 = vld [vmem:[#allocation7 + $0x28] sm:$0xff] }
  0x51   :  { %v73_v11 = vpack.c.bf16 %v65_v9, %v65_v9  ;;  %v784_v21 = vld [vmem:[#allocation7 + $0x18] sm:$0xff]  ;;  %v1107_v25 = vpack.c.bf16 %v786_v24, %v785_v23  ;;  %v791_v33 = vld [vmem:[#allocation7 + $0x50] sm:$0xff]  ;;  %v793_v36 = vld [vmem:[#allocation7 + $0x60] sm:$0xff] }
  0x52   :  { %973 = vmatpush3.bf16.msra.mxu0 %v1161_v26  ;;  %v1104_v22 = vpack.c.bf16 %v784_v21, %v783_v20  ;;  %v787_v26 = vld [vmem:[#allocation7 + $0x30] sm:$0xff]  ;;  %v792_v34 = vld [vmem:[#allocation7 + $0x58] sm:$0xff] }
  0x53   :  { %995 = vmatpush3.bf16.msra.mxu1 %v1162_v27  ;;  %974 = vmatprep.subr.bf16.mxu0 %v1163_v28  ;;  %v788_v27 = vld [vmem:[#allocation7 + $0x38] sm:$0xff]  ;;  %v1116_v35 = vpack.c.bf16 %v792_v34, %v791_v33 }
  0x54   :  { %996 = vmatprep.subr.bf16.mxu1 %v1164_v29  ;;  %v1110_v28 = vpack.c.bf16 %v788_v27, %v787_v26  ;;  %v789_v29 = vld [vmem:[#allocation7 + $0x40] sm:$0xff] }
  0x56   :  { %975 = vmatpush3.bf16.msra.mxu0 %v1165_v30  ;;  %v790_v30 = vld [vmem:[#allocation7 + $0x48] sm:$0xff] }
  0x57   :  { %997 = vmatpush3.bf16.msra.mxu1 %v1166_v31  ;;  %1004 = vmatprep.subr.bf16.mxu0 %v1167_v40  ;;  %v1306_v31 = vmov 0.0   ;;  %v1113_v32 = vpack.c.bf16 %v790_v30, %v789_v29  ;;  %v796_v40 = vld [vmem:[#allocation7 + $0x78] sm:$0xff] }
  0x58   :  { %1026 = vmatprep.subr.bf16.mxu1 %v1168_v41 }
  0x59   :  { %619 = vmatmul.mubr.bf16.vlgmr.msra.gmra.mrb[0].mxu0 %v66_v37  ;;  %v794_v37 = vld [vmem:[#allocation7 + $0x68] sm:$0xff] }
  0x5a   :  { %659 = vmatmul.mubr.bf16.vlgmr.msra.gmra.mrb[0].mxu1 %v68_v39  ;;  %1005 = vmatpush3.bf16.msra.mxu0 %v1169_v42  ;;  %v1119_v38 = vpack.c.bf16 %v794_v37, %v793_v36  ;;  %v795_v39 = vld [vmem:[#allocation7 + $0x70] sm:$0xff]  ;;  %v768_v42 = vlaneseq }
  0x5b   :  { %1027 = vmatpush3.bf16.msra.mxu1 %v1170_v43  ;;  %1006 = vmatprep.subr.bf16.mxu0 %v1171_v44  ;;  %v1122_v41 = vpack.c.bf16 %v796_v40, %v795_v39 }
  0x5c   :  { %1028 = vmatprep.subr.bf16.mxu1 %v1172_v45  ;;  %698 = vmatprep.mubr.bf16.mxu0 %v71_v10  ;;  %v769_v43 = vshrl.u32 %v768_v42, 7  ;;  %v763_v45 = vld [vmem:[%s1388_s2] sm:$0x7]  ;;  %v872_v39 = vand.u32 127, %v768_v42  ;;  %s1307_s2 = smov [#allocation8]  }
  0x5d   :  { %738 = vmatprep.mubr.bf16.mxu1 %v73_v11  ;;  %s886_s28 = sshll.u32 %s1307_s2, 4  ;;  %s887_s28 = int_to_ptr.vmem [resolvable:$true] %s886_s28 }
  0x5e   :  { %1007 = vmatpush3.bf16.msra.mxu0 %v1173_v46  ;;  %v799_v44 = vsub.s32 2, %v769_v43  ;;  %v770_v24 = vsub.s32 0, %v769_v43  ;;  %vm873_vm2 = vcmp.ge.s32.totalorder %v872_v39, 12  ;;  %vm874_vm3 = vcmp.lt.s32.totalorder %v872_v39, 14  ;;  %s1269_s29 = scalar_lea.vmem %s887_s28, 128  ;;  %p1274_p11 = scmp.lt.s32.totalorder %s887_s28, %s887_s28 }
  0x5f   :  { %1029 = vmatpush3.bf16.msra.mxu1 %v1174_v47  ;;  %1008 = vmatprep.subr.bf16.mxu0 %v1175_v48  ;;  %vm875_vm4 = vmand %vm873_vm2, %vm874_vm3  ;;  %p1270_p10 = scmp.ne.s32.totalorder %s887_s28, %s1269_s29  ;;  %p1275_p12 = scmp.lt.s32.totalorder %s1269_s29, %s1269_s29 }
  0x60   :  { %1030 = vmatprep.subr.bf16.mxu1 %v1176_v49  ;;  %v800_v46 = vrot.slane %v763_v45, %v799_v44  ;;  %v771_v27 = vrot.slane %v763_v45, %v770_v24 }
  0x61   :  { %p1276_p13 = por %p1275_p12, %p1274_p11 }
  0x62   :  { %1009 = vmatpush3.bf16.msra.mxu0 %v1177_v50 }
  0x63   :  { %1031 = vmatpush3.bf16.msra.mxu1 %v1178_v51  ;;  %1010 = vmatprep.subr.bf16.mxu0 %v1179_v52  ;;  %p1277_p0 = pnand %p1276_p13, %p1270_p10 }
  0x64   :  { %1032 = vmatprep.subr.bf16.mxu1 %v1180_v53 }
  0x66   :  { %1011 = vmatpush3.bf16.msra.mxu0 %v1181_v54 }
  0x67   :  { %1033 = vmatpush3.bf16.msra.mxu1 %v1182_v55  ;;  %1012 = vmatprep.subr.bf16.mxu0 %v1183_v56 }
  0x68   :  { %1034 = vmatprep.subr.bf16.mxu1 %v1184_v57 }
  0x6a   :  { %1013 = vmatpush3.bf16.msra.mxu0 %v1185_v58 }
  0x6b   :  { %1035 = vmatpush3.bf16.msra.mxu1 %v1186_v59  ;;  %1014 = vmatprep.subr.bf16.mxu0 %v1187_v60 }
  0x6c   :  { %1036 = vmatprep.subr.bf16.mxu1 %v1188_v61 }
  0x6e   :  { %1015 = vmatpush3.bf16.msra.mxu0 %v1189_v62 }
  0x6f   :  { %1037 = vmatpush3.bf16.msra.mxu1 %v1190_v63  ;;  %1016 = vmatprep.subr.bf16.mxu0 %v1191_v0 }
  0x70   :  { %1038 = vmatprep.subr.bf16.mxu1 %v1192_v1 }
  0x72   :  { %1017 = vmatpush3.bf16.msra.mxu0 %v1193_v2 }
  0x73   :  { %1039 = vmatpush3.bf16.msra.mxu1 %v1194_v3  ;;  %1018 = vmatprep.subr.bf16.mxu0 %v1195_v4 }
  0x74   :  { %1040 = vmatprep.subr.bf16.mxu1 %v1196_v5 }
  0x76   :  { %1019 = vmatpush3.bf16.msra.mxu0 %v1197_v6 }
  0x77   :  { %1041 = vmatpush3.bf16.msra.mxu1 %v1198_v7  ;;  %1100 = vmatprep.subr.bf16.mxu0 %v1304_v19 }
  0x79   :  { %699 = vmatmul.mubr.bf16.vlgmr.msra.gmra.mrb[4].mxu0 %v70_v14 }
  0x7a   :  { %739 = vmatmul.mubr.bf16.vlgmr.msra.gmra.mrb[4].mxu1 %v72_v15  ;;  %1102 = vmatpush3.bf16.msra.mxu0 %v1101_v18 }
  0x7b   :  { %1103 = vmatprep.subr.bf16.mxu0 %v1304_v19  ;;  %1097 = vmatprep.mubr.msk.f32.mxu0 %vm1305_vm0, %v1306_v31 }
  0x7e   :  { %1105 = vmatpush3.bf16.msra.mxu0 %v1104_v22 }
  0x7f   :  { %1106 = vmatprep.subr.bf16.mxu0 %v1304_v19 }
  0x82   :  { %1108 = vmatpush3.bf16.msra.mxu0 %v1107_v25  ;;  %v775_v25 = vsub.s32 1, %v769_v43 }
  0x83   :  { %1109 = vmatprep.subr.bf16.mxu0 %v1304_v19 }
  0x84   :  { %v776_v30 = vrot.slane %v763_v45, %v775_v25 }
  0x86   :  { %1111 = vmatpush3.bf16.msra.mxu0 %v1110_v28 }
  0x87   :  { %1112 = vmatprep.subr.bf16.mxu0 %v1304_v19 }
  0x8a   :  { %1114 = vmatpush3.bf16.msra.mxu0 %v1113_v32 }
  0x8b   :  { %1115 = vmatprep.subr.bf16.mxu0 %v1304_v19 }
  0x8e   :  { %1117 = vmatpush3.bf16.msra.mxu0 %v1116_v35 }
  0x8f   :  { %1118 = vmatprep.subr.bf16.mxu0 %v1304_v19 }
  0x92   :  { %1120 = vmatpush3.bf16.msra.mxu0 %v1119_v38 }
  0x93   :  { %1121 = vmatprep.subr.bf16.mxu0 %v1304_v19 }
  0x96   :  { %1123 = vmatpush3.bf16.msra.mxu0 %v1122_v41 }
 0x12c   :  { %v976_v47 = vpop.f32.mrb[0].mxu0 }
 0x12d   :  { %v998_v48 = vpop.f32.mrb[0].mxu1  ;;  %v977_v49 = vpop.f32.mrb[1].mxu0 }
 0x12e   :  { %v999_v50 = vpop.f32.mrb[1].mxu1  ;;  %v978_v51 = vadd.f32 %v977_v49, %v976_v47  ;;  %v979_v53 = vpop.f32.mrb[2].mxu0 }
 0x12f   :  { %v1000_v52 = vadd.f32 %v999_v50, %v998_v48  ;;  %v1001_v54 = vpop.f32.mrb[2].mxu1  ;;  %v980_v55 = vpop.f32.mrb[3].mxu0 }
 0x130   :  { %v1002_v56 = vpop.f32.mrb[3].mxu1 }
 0x131   :  { %v661_v57 = vadd.f32 %v1000_v52, %v978_v51 }
 0x14c   :  { %v1020_v58 = vpop.f32.mrb[4].mxu0 }
 0x14d   :  { %v1042_v59 = vpop.f32.mrb[4].mxu1  ;;  %v1021_v60 = vpop.f32.mrb[5].mxu0 }
 0x14e   :  { %v1022_v61 = vadd.f32 %v1021_v60, %v1020_v58  ;;  %v1043_v62 = vpop.f32.mrb[5].mxu1  ;;  %v1023_v63 = vpop.f32.mrb[6].mxu0 }
 0x14f   :  { %v1044_v0 = vadd.f32 %v1043_v62, %v1042_v59  ;;  %v1045_v1 = vpop.f32.mrb[6].mxu1  ;;  %v1024_v2 = vpop.f32.mrb[7].mxu0 }
 0x150   :  { %v701_v3 = vadd.f32 %v1022_v61, %v661_v57  ;;  %v1046_v4 = vpop.f32.mrb[7].mxu1 }
 0x152   :  { %v741_v5 = vadd.f32 %v1044_v0, %v701_v3 }
 0x154   :  { %v746_v6 = vrot.slane %v741_v5, 4  ;;  %v752_v7 = vmul.f32 %v741_v5, %v741_v5 }
 0x156   :  { %v747_v8 = vadd.f32 %v746_v6, %v741_v5  ;;  %v753_v9 = vrot.slane %v752_v7, 4 }
 0x158   :  { %v748_v10 = vrot.slane %v747_v8, 2  ;;  %v754_v11 = vadd.f32 %v753_v9, %v752_v7 }
 0x15a   :  { %v749_v12 = vadd.f32 %v748_v10, %v747_v8  ;;  %v755_v13 = vrot.slane %v754_v11, 2 }
 0x15c   :  { %v750_v14 = vrot.slane %v749_v12, 1  ;;  %v756_v15 = vadd.f32 %v755_v13, %v754_v11 }
 0x15e   :  { %v751_v16 = vadd.f32 %v750_v14, %v749_v12  ;;  %v757_v17 = vrot.slane %v756_v15, 1 }
 0x160   :  { %v758_v18 = vadd.f32 %v757_v17, %v756_v15  ;;  %v759_v19 = vmul.f32 0.125, %v751_v16 }
 0x162   :  { %v760_v20 = vmul.f32 0.125, %v758_v18  ;;  %v761_v21 = vmul.f32 %v759_v19, %v759_v19  ;;  %v764_v26 = vsub.f32 %v741_v5, %v759_v19 }
 0x164   :  { %v762_v22 = vsub.f32 %v760_v20, %v761_v21 }
 0x166   :  { %v765_v23 = vadd.f32 1e-05, %v762_v22 }
 0x168   :  { %1199 = vrsqrt.f32 %v765_v23 }
 0x172   :  { %v1200_v28 = vpop.eup %1199 }
 0x173   :  { %v767_v29 = vmul.f32 %v1200_v28, %v764_v26 }
 0x175   :  { %v772_v31 = vmul.f32 %v771_v27, %v767_v29 }
 0x177   :  { %v777_v32 = vadd.f32 %v776_v30, %v772_v31 }
 0x179   :  { %vm778_vm1 = vcmp.ge.f32.partialorder %v777_v32, 0.0  ;;  %v779_v33 = vmul.f32 0.1, %v777_v32 }
 0x17b   :  { %v780_v34 = vsel %vm778_vm1, %v777_v32, %v779_v33 }
 0x17c   :  { %1098 = vmatmul.mubr.f32.vlgmr.msra.gmra.mrb[8].mxu0 %v780_v34 }
 0x24f   :  { %v867_v35 = vpop.f32.mrb[8].mxu0 }
 0x250   :  { %v868_v36 = vadd.f32 %v867_v35, %v800_v46  ;;  %v1099_v37 = vpop.f32.mrb[9].mxu0 }
 0x252   :  { %v876_v38 = vmul.f32 1.442695, %v868_v36 }
 0x254   :  { %1201 = vpow2.f32 %v876_v38 }
 0x25e   :  { %v1202_v40 = vpop.eup %1201 }
 0x25f   :  { %v878_v41 = vsel %vm875_vm4, %v1202_v40, %v868_v36 }
 0x260   :  { %879 = vst [vmem:[#allocation8] sm:$0xff] %v878_v41 }
 0x261   :  { %1280 = shalt.err (!%p1277_p0)
}
 0x262   :  { %s1281_s6 = scalar_lea.hbm %s1390_s4, 128 }
 0x263   :  { %p1282_p1 = scmp.ne.s32.totalorder %s1390_s4, %s1281_s6  ;;  %p1285_p2 = scmp.lt.u32.totalorder %s1281_s6, %s1390_s4 }
 0x265   :  { %p1287_p3 = pnand %p1285_p2, %p1282_p1 }
 0x267   :  { %1290 = shalt.err (!%p1287_p3)
}
 0x268   :  { %889 = dma.vmem_to_hbm [thread:$0]  %s887_s28, 128, %s1390_s4, [#allocation4]  }
 0x269   :  { %1295 = dma.done.wait [#allocation4], 128  }
 0x26a   :  { %1296 = vsyncadd [#allocation4], 4294967168 }
 0x26b   :  { %893 = vsyncpa [#allocation3], 1 }
 0x26c   :  { %894 = vsyncpa [#allocation6], 1 }
 0x26d   :  { %895 = vsyncpa [#allocation4], 1 }

</bundles_post_ra>
